<compile_context>
chip_gen: v5e
topology: v5e:2x2
jax: 0.10.0
libtpu: 0.0.40
codegen_flags: <defaults>
</compile_context>

<pallas_src>
import jax
import jax.numpy as jnp
from jax.experimental import pallas as pl
from jax.experimental.pallas import tpu as pltpu


# ---------------------------------------------------------------------------
# Fused kernel: GRU recurrence (final hidden state) + rank logits epilogue.
# ---------------------------------------------------------------------------
def gru_and_rank(x_flat, wih, whh, bih, bhh, emb_table, S, B):
    """x_flat: [S*B, E] time-major flattened, masked history embeddings (f32)."""
    E = wih.shape[0]
    H = whh.shape[0]
    n_iid, emb_dim = emb_table.shape
    assert emb_dim == E, "GRU input dim must equal the embedding dim"
    # The fused rank epilogue contracts h_final against emb_table's last dim.
    assert H == emb_dim, "fused rank epilogue requires HIDDEN_SIZE == EMBEDDING_DIM"

    if S == 0:
        # Empty history: h0 = 0 -> zero logits.  Avoids a zero-sized VMEM scratch.
        return (jnp.zeros((B, H), jnp.float32),
                jnp.zeros((B, n_iid), jnp.float32))

    bf16 = jnp.bfloat16
    # Gate-split + bf16 casts happen once, outside the kernel (trace-time slices
    # of static weights; MXU on v5e/v6e/v7x is bf16-native).
    x_bf = x_flat.astype(bf16)                                    # [S*B, E]
    wih_rz = wih[:, :2 * H].astype(bf16)                          # [E, 2H]
    wih_n = wih[:, 2 * H:].astype(bf16)                           # [E, H]
    whh_rz = whh[:, :2 * H].astype(bf16)                          # [H, 2H]
    whh_n = whh[:, 2 * H:].astype(bf16)                           # [H, H]
    bih_rz = bih[:, :2 * H].astype(jnp.float32)                   # [1, 2H]
    bih_n = bih[:, 2 * H:].astype(jnp.float32)                    # [1, H]
    bhh_rz = bhh[:, :2 * H].astype(jnp.float32)                   # [1, 2H]
    bhh_n = bhh[:, 2 * H:].astype(jnp.float32)                    # [1, H]
    # Pre-transposed item table (static weight): guarantees a plain (K,N)
    # contraction with no in-kernel transpose/relayout of the full table.
    emb_t = emb_table.T.astype(bf16)                              # [E, n_iid]

    def kernel(x_ref, wih_rz_ref, wih_n_ref, whh_rz_ref, whh_n_ref,
               bih_rz_ref, bih_n_ref, bhh_rz_ref, bhh_n_ref, emb_t_ref,
               user_ref, rank_ref, gi_rz_ref, gi_n_ref):
        # --- Hoisted input projection (off the serial path): two batched bf16
        #     MXU pushes, gate-split so the per-step reads are lane-offset free.
        #     b_ih is folded in here once, not re-added every step.
        x = x_ref[...]                                            # [S*B, E] bf16
        gi_rz_ref[...] = (jnp.dot(x, wih_rz_ref[...],
                                  preferred_element_type=jnp.float32)
                          + bih_rz_ref[...])                      # [S*B, 2H] f32
        gi_n_ref[...] = (jnp.dot(x, wih_n_ref[...],
                                 preferred_element_type=jnp.float32)
                         + bih_n_ref[...])                        # [S*B, H] f32
        # TODO(synk): for production S, stage gi in bf16 and compute it in
        # time-chunks into a double-buffered (2, Tc*B, .) scratch so the staging
        # stays within v7x's 64 MiB VMEM instead of scaling with S.

        whh_rz_v = whh_rz_ref[...]                                # loop-invariant
        whh_n_v = whh_n_ref[...]
        # TODO(synk): hold W_hh stationary in the MXU across the recurrence via
        # pltpu.matmul_push_rhs / matmul_acc_lhs / matmul_pop to drop the
        # per-step RHS push latency from the serial chain.
        # Hoist bias broadcasts out of the loop (JAX does not CSE broadcasts).
        bhh_rz_b = jnp.broadcast_to(bhh_rz_ref[...], (B, 2 * H))
        bhh_n_b = jnp.broadcast_to(bhh_n_ref[...], (B, H))

        def step(t, h):
            row = t * B
            if B % 8 == 0:
                row = pl.multiple_of(row, 8)   # sublane-aligned f32 rows
            gi_rz = gi_rz_ref[pl.ds(row, B), :]                   # [B, 2H]
            gi_n = gi_n_ref[pl.ds(row, B), :]                     # [B, H]
            h_b = h.astype(jnp.bfloat16)
            gh_rz = jnp.dot(h_b, whh_rz_v,
                            preferred_element_type=jnp.float32) + bhh_rz_b
            gh_n = jnp.dot(h_b, whh_n_v,
                           preferred_element_type=jnp.float32) + bhh_n_b
            # One EUP push over the contiguous r|z slab, then split.
            rz = jax.nn.sigmoid(gi_rz + gh_rz)                    # [B, 2H]
            r = rz[:, :H]
            z = rz[:, H:]
            n = jnp.tanh(gi_n + r * gh_n)
            return n + z * (h - n)             # == (1 - z) * n + z * h

        # Serial recurrence; bounded unroll keeps LLO visibility without the
        # code-size / live-range blowup of a full unroll at large S.
        h_final = jax.lax.fori_loop(0, S, step,
                                    jnp.zeros((B, H), jnp.float32),
                                    unroll=max(1, min(8, S)))

        user_ref[...] = h_final.astype(user_ref.dtype)

        # --- Fused rank epilogue: user_eb @ emb_table.T as a plain (B,E)x(E,N)
        #     bf16 matmul against the pre-transposed table; lane-dense store.
        # TODO(synk): at production n_iid, tile N onto a parallel grid axis
        # (multiples of 256) so v7x can engage both TensorCores.
        rank_ref[...] = jnp.dot(h_final.astype(jnp.bfloat16), emb_t_ref[...],
                                preferred_element_type=jnp.float32
                                ).astype(rank_ref.dtype)

    # Single invocation (no grid): every operand is small and fully VMEM-resident.
    return pl.pallas_call(
        kernel,
        out_shape=(jax.ShapeDtypeStruct((B, H), jnp.float32),
                   jax.ShapeDtypeStruct((B, n_iid), jnp.float32)),
        scratch_shapes=[pltpu.VMEM((S * B, 2 * H), jnp.float32),   # gi_{r|z}
                        pltpu.VMEM((S * B, H), jnp.float32)],      # gi_n
        compiler_params=pltpu.CompilerParams(
            vmem_limit_bytes=32 * 1024 * 1024),
    )(x_bf, wih_rz, wih_n, whh_rz, whh_n,
      bih_rz, bih_n, bhh_rz, bhh_n, emb_t)


# ---------------------------------------------------------------------------
# Forward (glue: embedding gather, mask, layout) — mirrors GRU.forward.
# ---------------------------------------------------------------------------
@jax.jit
def gru_model_forward(mid_his_batch_ph, mask, emb_table, wih, whh, bih, bhh):
    B, S = mid_his_batch_ph.shape
    # TODO(synk): at production S*B*E move this gather/mask in-kernel via
    # scalar-prefetched indices (PrefetchScalarGridSpec + pl.Element row gather)
    # so emb_table is read from HBM only once and [B,S,E] never materializes.
    his_emb = jnp.take(emb_table, mid_his_batch_ph, axis=0)            # [B, S, E]
    item_his_eb = his_emb * mask[..., None].astype(emb_table.dtype)    # mask * emb
    # (item_his_eb_sum is computed in the reference module but unused downstream.)
    x_flat = jnp.transpose(item_his_eb, (1, 0, 2)).reshape(S * B, -1)  # [S*B, E]
    user_eb, rank = gru_and_rank(x_flat, wih, whh, bih, bhh, emb_table, S, B)
    # TODO(synk): `Loss(n_negtive)` is an external, undefined class in the
    # reference module; return the rank logits (its input) and user_eb instead.
    return user_eb, rank


# ---------------------------------------------------------------------------
# Pure-JAX reference mirroring the kernel's bf16-MXU / f32-accumulate math.
# ---------------------------------------------------------------------------
def gru_ref(x_sbe, wih, whh, bih, bhh):
    H = whh.shape[0]
    bf16 = jnp.bfloat16
    wih_b = wih.astype(bf16)
    whh_b = whh.astype(bf16)
    x_bf = x_sbe.astype(bf16)

    def step(h, x_t):
        gi = jnp.dot(x_t, wih_b, preferred_element_type=jnp.float32) + bih
        gh = jnp.dot(h.astype(bf16), whh_b,
                     preferred_element_type=jnp.float32) + bhh
        r = jax.nn.sigmoid(gi[:, :H] + gh[:, :H])
        z = jax.nn.sigmoid(gi[:, H:2 * H] + gh[:, H:2 * H])
        n = jnp.tanh(gi[:, 2 * H:] + r * gh[:, 2 * H:])
        return (1.0 - z) * n + z * h, None

    h0 = jnp.zeros((x_sbe.shape[1], H), jnp.float32)
    h_final, _ = jax.lax.scan(step, h0, x_bf)
    return h_final


if __name__ == "__main__":
    # Small shapes consistent with the module's constructor arguments.
    N_IID, EMB_DIM, HIDDEN, BATCH, SEQ_LEN = 512, 32, 32, 8, 8

    key = jax.random.PRNGKey(0)
    k1, k2, k3, k4, k5, k6, k7 = jax.random.split(key, 7)

    emb_table = jax.random.normal(k1, (N_IID, EMB_DIM), jnp.float32) * 0.1
    bound = 1.0 / (HIDDEN ** 0.5)
    wih = jax.random.uniform(k2, (EMB_DIM, 3 * HIDDEN), jnp.float32, -bound, bound)
    whh = jax.random.uniform(k3, (HIDDEN, 3 * HIDDEN), jnp.float32, -bound, bound)
    bih = jax.random.uniform(k4, (1, 3 * HIDDEN), jnp.float32, -bound, bound)
    bhh = jax.random.uniform(k5, (1, 3 * HIDDEN), jnp.float32, -bound, bound)

    mid_his_batch_ph = jax.random.randint(k6, (BATCH, SEQ_LEN), 0, N_IID)
    mask = (jax.random.uniform(k7, (BATCH, SEQ_LEN)) > 0.3).astype(jnp.int32)

    user_eb, rank = gru_model_forward(mid_his_batch_ph, mask, emb_table,
                                      wih, whh, bih, bhh)
    jax.block_until_ready((user_eb, rank))

    # Reference check (GRU recurrence + rank matmul, same bf16 MXU precision).
    his_emb = jnp.take(emb_table, mid_his_batch_ph, axis=0)
    x_sbe = jnp.transpose(his_emb * mask[..., None].astype(jnp.float32), (1, 0, 2))
    user_ref = gru_ref(x_sbe, wih, whh, bih, bhh)
    rank_ref = jnp.dot(user_ref.astype(jnp.bfloat16),
                       emb_table.T.astype(jnp.bfloat16),
                       preferred_element_type=jnp.float32)

    assert jnp.allclose(user_eb, user_ref, atol=5e-3, rtol=5e-3), "GRU mismatch"
    assert jnp.allclose(rank, rank_ref, atol=1e-2, rtol=1e-2), "rank mismatch"

    print("KERNEL_OK")
</pallas_src>

<mosaic_0001>
module attributes {stable_mosaic.version = 11 : i64} {
  func.func @kernel(%arg0: memref<64x32xbf16, #tpu.memory_space<vmem>>, %arg1: memref<32x64xbf16, #tpu.memory_space<vmem>>, %arg2: memref<32x32xbf16, #tpu.memory_space<vmem>>, %arg3: memref<32x64xbf16, #tpu.memory_space<vmem>>, %arg4: memref<32x32xbf16, #tpu.memory_space<vmem>>, %arg5: memref<1x64xf32, #tpu.memory_space<vmem>>, %arg6: memref<1x32xf32, #tpu.memory_space<vmem>>, %arg7: memref<1x64xf32, #tpu.memory_space<vmem>>, %arg8: memref<1x32xf32, #tpu.memory_space<vmem>>, %arg9: memref<32x512xbf16, #tpu.memory_space<vmem>>, %arg10: memref<8x32xf32, #tpu.memory_space<vmem>>, %arg11: memref<8x512xf32, #tpu.memory_space<vmem>>, %arg12: memref<64x64xf32, #tpu.memory_space<vmem>>, %arg13: memref<64x32xf32, #tpu.memory_space<vmem>>) attributes {dimension_semantics = [], scalar_prefetch = 0 : i64, scratch_operands = 2 : i64, tpu.core_type = #tpu.core_type<tc>} {
    %c0 = arith.constant 0 : index
    %c0_0 = arith.constant 0 : index
    %0 = vector.load %arg0[%c0, %c0_0] : memref<64x32xbf16, #tpu.memory_space<vmem>>, vector<64x32xbf16>
    %c0_1 = arith.constant 0 : index
    %c0_2 = arith.constant 0 : index
    %1 = vector.load %arg1[%c0_1, %c0_2] : memref<32x64xbf16, #tpu.memory_space<vmem>>, vector<32x64xbf16>
    %cst = arith.constant dense<0.000000e+00> : vector<64x64xf32>
    %2 = tpu.matmul %0, %1, %cst {dimension_numbers = #tpu.dot_dimension_numbers<[1], [0], [0], [1], [0, 0, 1, 1], [], []>} : vector<64x32xbf16>, vector<32x64xbf16>, vector<64x64xf32> -> vector<64x64xf32>
    %c0_3 = arith.constant 0 : index
    %c0_4 = arith.constant 0 : index
    %3 = vector.load %arg5[%c0_3, %c0_4] : memref<1x64xf32, #tpu.memory_space<vmem>>, vector<1x64xf32>
    %4 = vector.broadcast %3 : vector<1x64xf32> to vector<64x64xf32>
    %5 = arith.addf %2, %4 : vector<64x64xf32>
    %c0_5 = arith.constant 0 : index
    %c0_6 = arith.constant 0 : index
    %6 = vector.load %arg12[%c0_5, %c0_6] : memref<64x64xf32, #tpu.memory_space<vmem>>, vector<64x64xf32>
    tpu.vector_store %arg12[%c0_5, %c0_6], %5 {strides = array<i32>} : memref<64x64xf32, #tpu.memory_space<vmem>>, vector<64x64xf32>,
    %c0_7 = arith.constant 0 : index
    %c0_8 = arith.constant 0 : index
    %7 = vector.load %arg2[%c0_7, %c0_8] : memref<32x32xbf16, #tpu.memory_space<vmem>>, vector<32x32xbf16>
    %cst_9 = arith.constant dense<0.000000e+00> : vector<64x32xf32>
    %8 = tpu.matmul %0, %7, %cst_9 {dimension_numbers = #tpu.dot_dimension_numbers<[1], [0], [0], [1], [0, 0, 1, 1], [], []>} : vector<64x32xbf16>, vector<32x32xbf16>, vector<64x32xf32> -> vector<64x32xf32>
    %c0_10 = arith.constant 0 : index
    %c0_11 = arith.constant 0 : index
    %9 = vector.load %arg6[%c0_10, %c0_11] : memref<1x32xf32, #tpu.memory_space<vmem>>, vector<1x32xf32>
    %10 = vector.broadcast %9 : vector<1x32xf32> to vector<64x32xf32>
    %11 = arith.addf %8, %10 : vector<64x32xf32>
    %c0_12 = arith.constant 0 : index
    %c0_13 = arith.constant 0 : index
    %12 = vector.load %arg13[%c0_12, %c0_13] : memref<64x32xf32, #tpu.memory_space<vmem>>, vector<64x32xf32>
    tpu.vector_store %arg13[%c0_12, %c0_13], %11 {strides = array<i32>} : memref<64x32xf32, #tpu.memory_space<vmem>>, vector<64x32xf32>,
    %c0_14 = arith.constant 0 : index
    %c0_15 = arith.constant 0 : index
    %13 = vector.load %arg3[%c0_14, %c0_15] : memref<32x64xbf16, #tpu.memory_space<vmem>>, vector<32x64xbf16>
    %c0_16 = arith.constant 0 : index
    %c0_17 = arith.constant 0 : index
    %14 = vector.load %arg4[%c0_16, %c0_17] : memref<32x32xbf16, #tpu.memory_space<vmem>>, vector<32x32xbf16>
    %c0_18 = arith.constant 0 : index
    %c0_19 = arith.constant 0 : index
    %15 = vector.load %arg7[%c0_18, %c0_19] : memref<1x64xf32, #tpu.memory_space<vmem>>, vector<1x64xf32>
    %16 = vector.shape_cast %15 : vector<1x64xf32> to vector<1x64xf32>
    %17 = vector.broadcast %16 : vector<1x64xf32> to vector<8x64xf32>
    %c0_20 = arith.constant 0 : index
    %c0_21 = arith.constant 0 : index
    %18 = vector.load %arg8[%c0_20, %c0_21] : memref<1x32xf32, #tpu.memory_space<vmem>>, vector<1x32xf32>
    %19 = vector.shape_cast %18 : vector<1x32xf32> to vector<1x32xf32>
    %20 = vector.broadcast %19 : vector<1x32xf32> to vector<8x32xf32>
    %cst_22 = arith.constant 0.000000e+00 : f32
    %21 = vector.broadcast %cst_22 : f32 to vector<8x32xf32>
    %c0_i32 = arith.constant 0 : i32
    %c8_i32 = arith.constant 8 : i32
    %22 = arith.muli %c0_i32, %c8_i32 : i32
    %23 = tpu.assume_multiple %22, 8 : i32
    %24 = arith.index_cast %23 : i32 to index
    %c0_23 = arith.constant 0 : index
    %25 = vector.load %arg12[%24, %c0_23] : memref<64x64xf32, #tpu.memory_space<vmem>>, vector<8x64xf32>
    %26 = arith.index_cast %23 : i32 to index
    %c0_24 = arith.constant 0 : index
    %27 = vector.load %arg13[%26, %c0_24] : memref<64x32xf32, #tpu.memory_space<vmem>>, vector<8x32xf32>
    %28 = arith.truncf %21 : vector<8x32xf32> to vector<8x32xbf16>
    %cst_25 = arith.constant dense<0.000000e+00> : vector<8x64xf32>
    %29 = tpu.matmul %28, %13, %cst_25 {dimension_numbers = #tpu.dot_dimension_numbers<[1], [0], [0], [1], [0, 0, 1, 1], [], []>} : vector<8x32xbf16>, vector<32x64xbf16>, vector<8x64xf32> -> vector<8x64xf32>
    %30 = arith.addf %29, %17 : vector<8x64xf32>
    %cst_26 = arith.constant dense<0.000000e+00> : vector<8x32xf32>
    %31 = tpu.matmul %28, %14, %cst_26 {dimension_numbers = #tpu.dot_dimension_numbers<[1], [0], [0], [1], [0, 0, 1, 1], [], []>} : vector<8x32xbf16>, vector<32x32xbf16>, vector<8x32xf32> -> vector<8x32xf32>
    %32 = arith.addf %31, %20 : vector<8x32xf32>
    %33 = arith.addf %25, %30 : vector<8x64xf32>
    %34 = arith.negf %33 : vector<8x64xf32>
    %35 = math.exp %34 : vector<8x64xf32>
    %cst_27 = arith.constant 1.000000e+00 : f32
    %36 = vector.broadcast %cst_27 : f32 to vector<8x64xf32>
    %37 = arith.addf %36, %35 : vector<8x64xf32>
    %38 = arith.divf %36, %37 : vector<8x64xf32>
    %39 = vector.extract_strided_slice %38 {offsets = [0, 0], sizes = [8, 32], strides = [1, 1]} : vector<8x64xf32> to vector<8x32xf32>
    %40 = vector.extract_strided_slice %38 {offsets = [0, 32], sizes = [8, 32], strides = [1, 1]} : vector<8x64xf32> to vector<8x32xf32>
    %41 = arith.mulf %39, %32 : vector<8x32xf32>
    %42 = arith.addf %27, %41 : vector<8x32xf32>
    %43 = math.tanh %42 : vector<8x32xf32>
    %44 = arith.subf %21, %43 : vector<8x32xf32>
    %45 = arith.mulf %40, %44 : vector<8x32xf32>
    %46 = arith.addf %43, %45 : vector<8x32xf32>
    %c1_i32 = arith.constant 1 : i32
    %c8_i32_28 = arith.constant 8 : i32
    %47 = arith.muli %c1_i32, %c8_i32_28 : i32
    %48 = tpu.assume_multiple %47, 8 : i32
    %49 = arith.index_cast %48 : i32 to index
    %c0_29 = arith.constant 0 : index
    %50 = vector.load %arg12[%49, %c0_29] : memref<64x64xf32, #tpu.memory_space<vmem>>, vector<8x64xf32>
    %51 = arith.index_cast %48 : i32 to index
    %c0_30 = arith.constant 0 : index
    %52 = vector.load %arg13[%51, %c0_30] : memref<64x32xf32, #tpu.memory_space<vmem>>, vector<8x32xf32>
    %53 = arith.truncf %46 : vector<8x32xf32> to vector<8x32xbf16>
    %cst_31 = arith.constant dense<0.000000e+00> : vector<8x64xf32>
    %54 = tpu.matmul %53, %13, %cst_31 {dimension_numbers = #tpu.dot_dimension_numbers<[1], [0], [0], [1], [0, 0, 1, 1], [], []>} : vector<8x32xbf16>, vector<32x64xbf16>, vector<8x64xf32> -> vector<8x64xf32>
    %55 = arith.addf %54, %17 : vector<8x64xf32>
    %cst_32 = arith.constant dense<0.000000e+00> : vector<8x32xf32>
    %56 = tpu.matmul %53, %14, %cst_32 {dimension_numbers = #tpu.dot_dimension_numbers<[1], [0], [0], [1], [0, 0, 1, 1], [], []>} : vector<8x32xbf16>, vector<32x32xbf16>, vector<8x32xf32> -> vector<8x32xf32>
    %57 = arith.addf %56, %20 : vector<8x32xf32>
    %58 = arith.addf %50, %55 : vector<8x64xf32>
    %59 = arith.negf %58 : vector<8x64xf32>
    %60 = math.exp %59 : vector<8x64xf32>
    %cst_33 = arith.constant 1.000000e+00 : f32
    %61 = vector.broadcast %cst_33 : f32 to vector<8x64xf32>
    %62 = arith.addf %61, %60 : vector<8x64xf32>
    %63 = arith.divf %61, %62 : vector<8x64xf32>
    %64 = vector.extract_strided_slice %63 {offsets = [0, 0], sizes = [8, 32], strides = [1, 1]} : vector<8x64xf32> to vector<8x32xf32>
    %65 = vector.extract_strided_slice %63 {offsets = [0, 32], sizes = [8, 32], strides = [1, 1]} : vector<8x64xf32> to vector<8x32xf32>
    %66 = arith.mulf %64, %57 : vector<8x32xf32>
    %67 = arith.addf %52, %66 : vector<8x32xf32>
    %68 = math.tanh %67 : vector<8x32xf32>
    %69 = arith.subf %46, %68 : vector<8x32xf32>
    %70 = arith.mulf %65, %69 : vector<8x32xf32>
    %71 = arith.addf %68, %70 : vector<8x32xf32>
    %c2_i32 = arith.constant 2 : i32
    %c8_i32_34 = arith.constant 8 : i32
    %72 = arith.muli %c2_i32, %c8_i32_34 : i32
    %73 = tpu.assume_multiple %72, 8 : i32
    %74 = arith.index_cast %73 : i32 to index
    %c0_35 = arith.constant 0 : index
    %75 = vector.load %arg12[%74, %c0_35] : memref<64x64xf32, #tpu.memory_space<vmem>>, vector<8x64xf32>
    %76 = arith.index_cast %73 : i32 to index
    %c0_36 = arith.constant 0 : index
    %77 = vector.load %arg13[%76, %c0_36] : memref<64x32xf32, #tpu.memory_space<vmem>>, vector<8x32xf32>
    %78 = arith.truncf %71 : vector<8x32xf32> to vector<8x32xbf16>
    %cst_37 = arith.constant dense<0.000000e+00> : vector<8x64xf32>
    %79 = tpu.matmul %78, %13, %cst_37 {dimension_numbers = #tpu.dot_dimension_numbers<[1], [0], [0], [1], [0, 0, 1, 1], [], []>} : vector<8x32xbf16>, vector<32x64xbf16>, vector<8x64xf32> -> vector<8x64xf32>
    %80 = arith.addf %79, %17 : vector<8x64xf32>
    %cst_38 = arith.constant dense<0.000000e+00> : vector<8x32xf32>
    %81 = tpu.matmul %78, %14, %cst_38 {dimension_numbers = #tpu.dot_dimension_numbers<[1], [0], [0], [1], [0, 0, 1, 1], [], []>} : vector<8x32xbf16>, vector<32x32xbf16>, vector<8x32xf32> -> vector<8x32xf32>
    %82 = arith.addf %81, %20 : vector<8x32xf32>
    %83 = arith.addf %75, %80 : vector<8x64xf32>
    %84 = arith.negf %83 : vector<8x64xf32>
    %85 = math.exp %84 : vector<8x64xf32>
    %cst_39 = arith.constant 1.000000e+00 : f32
    %86 = vector.broadcast %cst_39 : f32 to vector<8x64xf32>
    %87 = arith.addf %86, %85 : vector<8x64xf32>
    %88 = arith.divf %86, %87 : vector<8x64xf32>
    %89 = vector.extract_strided_slice %88 {offsets = [0, 0], sizes = [8, 32], strides = [1, 1]} : vector<8x64xf32> to vector<8x32xf32>
    %90 = vector.extract_strided_slice %88 {offsets = [0, 32], sizes = [8, 32], strides = [1, 1]} : vector<8x64xf32> to vector<8x32xf32>
    %91 = arith.mulf %89, %82 : vector<8x32xf32>
    %92 = arith.addf %77, %91 : vector<8x32xf32>
    %93 = math.tanh %92 : vector<8x32xf32>
    %94 = arith.subf %71, %93 : vector<8x32xf32>
    %95 = arith.mulf %90, %94 : vector<8x32xf32>
    %96 = arith.addf %93, %95 : vector<8x32xf32>
    %c3_i32 = arith.constant 3 : i32
    %c8_i32_40 = arith.constant 8 : i32
    %97 = arith.muli %c3_i32, %c8_i32_40 : i32
    %98 = tpu.assume_multiple %97, 8 : i32
    %99 = arith.index_cast %98 : i32 to index
    %c0_41 = arith.constant 0 : index
    %100 = vector.load %arg12[%99, %c0_41] : memref<64x64xf32, #tpu.memory_space<vmem>>, vector<8x64xf32>
    %101 = arith.index_cast %98 : i32 to index
    %c0_42 = arith.constant 0 : index
    %102 = vector.load %arg13[%101, %c0_42] : memref<64x32xf32, #tpu.memory_space<vmem>>, vector<8x32xf32>
    %103 = arith.truncf %96 : vector<8x32xf32> to vector<8x32xbf16>
    %cst_43 = arith.constant dense<0.000000e+00> : vector<8x64xf32>
    %104 = tpu.matmul %103, %13, %cst_43 {dimension_numbers = #tpu.dot_dimension_numbers<[1], [0], [0], [1], [0, 0, 1, 1], [], []>} : vector<8x32xbf16>, vector<32x64xbf16>, vector<8x64xf32> -> vector<8x64xf32>
    %105 = arith.addf %104, %17 : vector<8x64xf32>
    %cst_44 = arith.constant dense<0.000000e+00> : vector<8x32xf32>
    %106 = tpu.matmul %103, %14, %cst_44 {dimension_numbers = #tpu.dot_dimension_numbers<[1], [0], [0], [1], [0, 0, 1, 1], [], []>} : vector<8x32xbf16>, vector<32x32xbf16>, vector<8x32xf32> -> vector<8x32xf32>
    %107 = arith.addf %106, %20 : vector<8x32xf32>
    %108 = arith.addf %100, %105 : vector<8x64xf32>
    %109 = arith.negf %108 : vector<8x64xf32>
    %110 = math.exp %109 : vector<8x64xf32>
    %cst_45 = arith.constant 1.000000e+00 : f32
    %111 = vector.broadcast %cst_45 : f32 to vector<8x64xf32>
    %112 = arith.addf %111, %110 : vector<8x64xf32>
    %113 = arith.divf %111, %112 : vector<8x64xf32>
    %114 = vector.extract_strided_slice %113 {offsets = [0, 0], sizes = [8, 32], strides = [1, 1]} : vector<8x64xf32> to vector<8x32xf32>
    %115 = vector.extract_strided_slice %113 {offsets = [0, 32], sizes = [8, 32], strides = [1, 1]} : vector<8x64xf32> to vector<8x32xf32>
    %116 = arith.mulf %114, %107 : vector<8x32xf32>
    %117 = arith.addf %102, %116 : vector<8x32xf32>
    %118 = math.tanh %117 : vector<8x32xf32>
    %119 = arith.subf %96, %118 : vector<8x32xf32>
    %120 = arith.mulf %115, %119 : vector<8x32xf32>
    %121 = arith.addf %118, %120 : vector<8x32xf32>
    %c4_i32 = arith.constant 4 : i32
    %c8_i32_46 = arith.constant 8 : i32
    %122 = arith.muli %c4_i32, %c8_i32_46 : i32
    %123 = tpu.assume_multiple %122, 8 : i32
    %124 = arith.index_cast %123 : i32 to index
    %c0_47 = arith.constant 0 : index
    %125 = vector.load %arg12[%124, %c0_47] : memref<64x64xf32, #tpu.memory_space<vmem>>, vector<8x64xf32>
    %126 = arith.index_cast %123 : i32 to index
    %c0_48 = arith.constant 0 : index
    %127 = vector.load %arg13[%126, %c0_48] : memref<64x32xf32, #tpu.memory_space<vmem>>, vector<8x32xf32>
    %128 = arith.truncf %121 : vector<8x32xf32> to vector<8x32xbf16>
    %cst_49 = arith.constant dense<0.000000e+00> : vector<8x64xf32>
    %129 = tpu.matmul %128, %13, %cst_49 {dimension_numbers = #tpu.dot_dimension_numbers<[1], [0], [0], [1], [0, 0, 1, 1], [], []>} : vector<8x32xbf16>, vector<32x64xbf16>, vector<8x64xf32> -> vector<8x64xf32>
    %130 = arith.addf %129, %17 : vector<8x64xf32>
    %cst_50 = arith.constant dense<0.000000e+00> : vector<8x32xf32>
    %131 = tpu.matmul %128, %14, %cst_50 {dimension_numbers = #tpu.dot_dimension_numbers<[1], [0], [0], [1], [0, 0, 1, 1], [], []>} : vector<8x32xbf16>, vector<32x32xbf16>, vector<8x32xf32> -> vector<8x32xf32>
    %132 = arith.addf %131, %20 : vector<8x32xf32>
    %133 = arith.addf %125, %130 : vector<8x64xf32>
    %134 = arith.negf %133 : vector<8x64xf32>
    %135 = math.exp %134 : vector<8x64xf32>
    %cst_51 = arith.constant 1.000000e+00 : f32
    %136 = vector.broadcast %cst_51 : f32 to vector<8x64xf32>
    %137 = arith.addf %136, %135 : vector<8x64xf32>
    %138 = arith.divf %136, %137 : vector<8x64xf32>
    %139 = vector.extract_strided_slice %138 {offsets = [0, 0], sizes = [8, 32], strides = [1, 1]} : vector<8x64xf32> to vector<8x32xf32>
    %140 = vector.extract_strided_slice %138 {offsets = [0, 32], sizes = [8, 32], strides = [1, 1]} : vector<8x64xf32> to vector<8x32xf32>
    %141 = arith.mulf %139, %132 : vector<8x32xf32>
    %142 = arith.addf %127, %141 : vector<8x32xf32>
    %143 = math.tanh %142 : vector<8x32xf32>
    %144 = arith.subf %121, %143 : vector<8x32xf32>
    %145 = arith.mulf %140, %144 : vector<8x32xf32>
    %146 = arith.addf %143, %145 : vector<8x32xf32>
    %c5_i32 = arith.constant 5 : i32
    %c8_i32_52 = arith.constant 8 : i32
    %147 = arith.muli %c5_i32, %c8_i32_52 : i32
    %148 = tpu.assume_multiple %147, 8 : i32
    %149 = arith.index_cast %148 : i32 to index
    %c0_53 = arith.constant 0 : index
    %150 = vector.load %arg12[%149, %c0_53] : memref<64x64xf32, #tpu.memory_space<vmem>>, vector<8x64xf32>
    %151 = arith.index_cast %148 : i32 to index
    %c0_54 = arith.constant 0 : index
    %152 = vector.load %arg13[%151, %c0_54] : memref<64x32xf32, #tpu.memory_space<vmem>>, vector<8x32xf32>
    %153 = arith.truncf %146 : vector<8x32xf32> to vector<8x32xbf16>
    %cst_55 = arith.constant dense<0.000000e+00> : vector<8x64xf32>
    %154 = tpu.matmul %153, %13, %cst_55 {dimension_numbers = #tpu.dot_dimension_numbers<[1], [0], [0], [1], [0, 0, 1, 1], [], []>} : vector<8x32xbf16>, vector<32x64xbf16>, vector<8x64xf32> -> vector<8x64xf32>
    %155 = arith.addf %154, %17 : vector<8x64xf32>
    %cst_56 = arith.constant dense<0.000000e+00> : vector<8x32xf32>
    %156 = tpu.matmul %153, %14, %cst_56 {dimension_numbers = #tpu.dot_dimension_numbers<[1], [0], [0], [1], [0, 0, 1, 1], [], []>} : vector<8x32xbf16>, vector<32x32xbf16>, vector<8x32xf32> -> vector<8x32xf32>
    %157 = arith.addf %156, %20 : vector<8x32xf32>
    %158 = arith.addf %150, %155 : vector<8x64xf32>
    %159 = arith.negf %158 : vector<8x64xf32>
    %160 = math.exp %159 : vector<8x64xf32>
    %cst_57 = arith.constant 1.000000e+00 : f32
    %161 = vector.broadcast %cst_57 : f32 to vector<8x64xf32>
    %162 = arith.addf %161, %160 : vector<8x64xf32>
    %163 = arith.divf %161, %162 : vector<8x64xf32>
    %164 = vector.extract_strided_slice %163 {offsets = [0, 0], sizes = [8, 32], strides = [1, 1]} : vector<8x64xf32> to vector<8x32xf32>
    %165 = vector.extract_strided_slice %163 {offsets = [0, 32], sizes = [8, 32], strides = [1, 1]} : vector<8x64xf32> to vector<8x32xf32>
    %166 = arith.mulf %164, %157 : vector<8x32xf32>
    %167 = arith.addf %152, %166 : vector<8x32xf32>
    %168 = math.tanh %167 : vector<8x32xf32>
    %169 = arith.subf %146, %168 : vector<8x32xf32>
    %170 = arith.mulf %165, %169 : vector<8x32xf32>
    %171 = arith.addf %168, %170 : vector<8x32xf32>
    %c6_i32 = arith.constant 6 : i32
    %c8_i32_58 = arith.constant 8 : i32
    %172 = arith.muli %c6_i32, %c8_i32_58 : i32
    %173 = tpu.assume_multiple %172, 8 : i32
    %174 = arith.index_cast %173 : i32 to index
    %c0_59 = arith.constant 0 : index
    %175 = vector.load %arg12[%174, %c0_59] : memref<64x64xf32, #tpu.memory_space<vmem>>, vector<8x64xf32>
    %176 = arith.index_cast %173 : i32 to index
    %c0_60 = arith.constant 0 : index
    %177 = vector.load %arg13[%176, %c0_60] : memref<64x32xf32, #tpu.memory_space<vmem>>, vector<8x32xf32>
    %178 = arith.truncf %171 : vector<8x32xf32> to vector<8x32xbf16>
    %cst_61 = arith.constant dense<0.000000e+00> : vector<8x64xf32>
    %179 = tpu.matmul %178, %13, %cst_61 {dimension_numbers = #tpu.dot_dimension_numbers<[1], [0], [0], [1], [0, 0, 1, 1], [], []>} : vector<8x32xbf16>, vector<32x64xbf16>, vector<8x64xf32> -> vector<8x64xf32>
    %180 = arith.addf %179, %17 : vector<8x64xf32>
    %cst_62 = arith.constant dense<0.000000e+00> : vector<8x32xf32>
    %181 = tpu.matmul %178, %14, %cst_62 {dimension_numbers = #tpu.dot_dimension_numbers<[1], [0], [0], [1], [0, 0, 1, 1], [], []>} : vector<8x32xbf16>, vector<32x32xbf16>, vector<8x32xf32> -> vector<8x32xf32>
    %182 = arith.addf %181, %20 : vector<8x32xf32>
    %183 = arith.addf %175, %180 : vector<8x64xf32>
    %184 = arith.negf %183 : vector<8x64xf32>
    %185 = math.exp %184 : vector<8x64xf32>
    %cst_63 = arith.constant 1.000000e+00 : f32
    %186 = vector.broadcast %cst_63 : f32 to vector<8x64xf32>
    %187 = arith.addf %186, %185 : vector<8x64xf32>
    %188 = arith.divf %186, %187 : vector<8x64xf32>
    %189 = vector.extract_strided_slice %188 {offsets = [0, 0], sizes = [8, 32], strides = [1, 1]} : vector<8x64xf32> to vector<8x32xf32>
    %190 = vector.extract_strided_slice %188 {offsets = [0, 32], sizes = [8, 32], strides = [1, 1]} : vector<8x64xf32> to vector<8x32xf32>
    %191 = arith.mulf %189, %182 : vector<8x32xf32>
    %192 = arith.addf %177, %191 : vector<8x32xf32>
    %193 = math.tanh %192 : vector<8x32xf32>
    %194 = arith.subf %171, %193 : vector<8x32xf32>
    %195 = arith.mulf %190, %194 : vector<8x32xf32>
    %196 = arith.addf %193, %195 : vector<8x32xf32>
    %c7_i32 = arith.constant 7 : i32
    %c8_i32_64 = arith.constant 8 : i32
    %197 = arith.muli %c7_i32, %c8_i32_64 : i32
    %198 = tpu.assume_multiple %197, 8 : i32
    %199 = arith.index_cast %198 : i32 to index
    %c0_65 = arith.constant 0 : index
    %200 = vector.load %arg12[%199, %c0_65] : memref<64x64xf32, #tpu.memory_space<vmem>>, vector<8x64xf32>
    %201 = arith.index_cast %198 : i32 to index
    %c0_66 = arith.constant 0 : index
    %202 = vector.load %arg13[%201, %c0_66] : memref<64x32xf32, #tpu.memory_space<vmem>>, vector<8x32xf32>
    %203 = arith.truncf %196 : vector<8x32xf32> to vector<8x32xbf16>
    %cst_67 = arith.constant dense<0.000000e+00> : vector<8x64xf32>
    %204 = tpu.matmul %203, %13, %cst_67 {dimension_numbers = #tpu.dot_dimension_numbers<[1], [0], [0], [1], [0, 0, 1, 1], [], []>} : vector<8x32xbf16>, vector<32x64xbf16>, vector<8x64xf32> -> vector<8x64xf32>
    %205 = arith.addf %204, %17 : vector<8x64xf32>
    %cst_68 = arith.constant dense<0.000000e+00> : vector<8x32xf32>
    %206 = tpu.matmul %203, %14, %cst_68 {dimension_numbers = #tpu.dot_dimension_numbers<[1], [0], [0], [1], [0, 0, 1, 1], [], []>} : vector<8x32xbf16>, vector<32x32xbf16>, vector<8x32xf32> -> vector<8x32xf32>
    %207 = arith.addf %206, %20 : vector<8x32xf32>
    %208 = arith.addf %200, %205 : vector<8x64xf32>
    %209 = arith.negf %208 : vector<8x64xf32>
    %210 = math.exp %209 : vector<8x64xf32>
    %cst_69 = arith.constant 1.000000e+00 : f32
    %211 = vector.broadcast %cst_69 : f32 to vector<8x64xf32>
    %212 = arith.addf %211, %210 : vector<8x64xf32>
    %213 = arith.divf %211, %212 : vector<8x64xf32>
    %214 = vector.extract_strided_slice %213 {offsets = [0, 0], sizes = [8, 32], strides = [1, 1]} : vector<8x64xf32> to vector<8x32xf32>
    %215 = vector.extract_strided_slice %213 {offsets = [0, 32], sizes = [8, 32], strides = [1, 1]} : vector<8x64xf32> to vector<8x32xf32>
    %216 = arith.mulf %214, %207 : vector<8x32xf32>
    %217 = arith.addf %202, %216 : vector<8x32xf32>
    %218 = math.tanh %217 : vector<8x32xf32>
    %219 = arith.subf %196, %218 : vector<8x32xf32>
    %220 = arith.mulf %215, %219 : vector<8x32xf32>
    %221 = arith.addf %218, %220 : vector<8x32xf32>
    %c8_i32_70 = arith.constant 8 : i32
    %c0_71 = arith.constant 0 : index
    %c0_72 = arith.constant 0 : index
    %222 = vector.load %arg10[%c0_71, %c0_72] : memref<8x32xf32, #tpu.memory_space<vmem>>, vector<8x32xf32>
    tpu.vector_store %arg10[%c0_71, %c0_72], %221 {strides = array<i32>} : memref<8x32xf32, #tpu.memory_space<vmem>>, vector<8x32xf32>,
    %223 = arith.truncf %221 : vector<8x32xf32> to vector<8x32xbf16>
    %c0_73 = arith.constant 0 : index
    %c0_74 = arith.constant 0 : index
    %224 = vector.load %arg9[%c0_73, %c0_74] : memref<32x512xbf16, #tpu.memory_space<vmem>>, vector<32x512xbf16>
    %cst_75 = arith.constant dense<0.000000e+00> : vector<8x512xf32>
    %225 = tpu.matmul %223, %224, %cst_75 {dimension_numbers = #tpu.dot_dimension_numbers<[1], [0], [0], [1], [0, 0, 1, 1], [], []>} : vector<8x32xbf16>, vector<32x512xbf16>, vector<8x512xf32> -> vector<8x512xf32>
    %c0_76 = arith.constant 0 : index
    %c0_77 = arith.constant 0 : index
    %226 = vector.load %arg11[%c0_76, %c0_77] : memref<8x512xf32, #tpu.memory_space<vmem>>, vector<8x512xf32>
    tpu.vector_store %arg11[%c0_76, %c0_77], %225 {strides = array<i32>} : memref<8x512xf32, #tpu.memory_space<vmem>>, vector<8x512xf32>,
    return
  }
}

</mosaic_0001>

<bundles_post_ra>
// kernel: gru_model_forward.1
= control target key start
LH: loop header
LB: loop body
LE: loop exit
PB: predicated region body
PF: predicated region fallthrough
CT: control target
= control target key end

     0   :  { %17 = vsyncpa [#allocation5], 0  ;;  %s1467_s0 = inlined_call_operand.vmem [shape: bf16[64,32], index: 0, kind: input, shape index: {}]   ;;  %s1468_s1 = inlined_call_operand.vmem [shape: bf16[32,64], index: 1, kind: input, shape index: {}]   ;;  %s1469_s2 = inlined_call_operand.vmem [shape: bf16[32,32], index: 2, kind: input, shape index: {}]   ;;  %s1470_s3 = inlined_call_operand.vmem [shape: bf16[32,64], index: 3, kind: input, shape index: {}]   ;;  %s1471_s4 = inlined_call_operand.vmem [shape: bf16[32,32], index: 4, kind: input, shape index: {}]   ;;  %s1472_s5 = inlined_call_operand.vmem [shape: f32[1,64], index: 5, kind: input, shape index: {}]   ;;  %s1473_s6 = inlined_call_operand.vmem [shape: f32[1,32], index: 6, kind: input, shape index: {}]   ;;  %s1474_s7 = inlined_call_operand.vmem [shape: f32[1,64], index: 7, kind: input, shape index: {}]   ;;  %s1475_s8 = inlined_call_operand.vmem [shape: f32[1,32], index: 8, kind: input, shape index: {}]   ;;  %s1476_s9 = inlined_call_operand.vmem [shape: bf16[32,512], index: 9, kind: input, shape index: {}]   ;;  %s1477_s10 = inlined_call_operand.hbm [shape: f32[8,32], index: 10, kind: output, shape index: {0}]   ;;  %s1478_s11 = inlined_call_operand.hbm [shape: f32[8,512], index: 11, kind: output, shape index: {1}]  }
   0x1   :  { %v1037_v0 = vld [vmem:[%s1468_s1 + $0x8] sm:$0xff]  ;;  %v1036_v2 = vld [vmem:[%s1468_s1] sm:$0xff] }
   0x2   :  { %v1232_v1 = vld [vmem:[%s1470_s3 + $0x8] sm:$0xff]  ;;  %107 = vmatpush.bf16.msra.mxu0 %v1037_v0  ;;  %v1244_v4 = vld [vmem:[%s1470_s3] sm:$0xff] }
   0x3   :  { %v1039_v3 = vld [vmem:[%s1469_s2 + $0x8] sm:$0xff]  ;;  %235 = vmatpush.bf16.msra.mxu2 %v1232_v1  ;;  %v1038_v6 = vld [vmem:[%s1469_s2] sm:$0xff] }
   0x4   :  { %v1249_v5 = vld [vmem:[%s1471_s4 + $0x8] sm:$0xff]  ;;  %165 = vmatpush.bf16.msra.mxu1 %v1039_v3  ;;  %v1257_v7 = vld [vmem:[%s1471_s4] sm:$0xff] }
   0x5   :  { %260 = vmatpush.bf16.msra.mxu3 %v1249_v5 }
   0x6   :  { %18 = vsyncpa [#allocation7], 0  ;;  %v1032_v8 = vld [vmem:[%s1467_s0] sm:$0xff]  ;;  %108 = vmatpush.bf16.msra.mxu0 %v1036_v2  ;;  %vm88_vm0 = vcmask 261120   ;;  %v1161_v9 = vmov 0   ;;  %vm130_vm1 = vcmask 523264  }
   0x7   :  { %236 = vmatpush.bf16.msra.mxu2 %v1244_v4  ;;  %v1286_v10 = vld [vmem:[%s1472_s5] ss:$0 sm:$0xff]  ;;  %s893_s30 = sshll.u32 %s1477_s10, 4  ;;  %s1165_s1 = smov [#allocation6]   ;;  %s894_s30 = int_to_ptr.hbm [resolvable:$true] %s893_s30 }
   0x8   :  { %166 = vmatpush.bf16.msra.mxu1 %v1038_v6  ;;  %v1291_v11 = vld [vmem:[%s1473_s6] ss:$0 sm:$0xff]  ;;  %s902_s12 = sshll.u32 %s1165_s1, 4  ;;  %s904_s2 = sshll.u32 %s1478_s11, 4  ;;  %s903_s12 = int_to_ptr.vmem [resolvable:$true] %s902_s12  ;;  %s905_s2 = int_to_ptr.hbm [resolvable:$true] %s904_s2 }
   0x9   :  { %261 = vmatpush.bf16.msra.mxu3 %v1257_v7  ;;  %942 = vmatmul.msk.bf16.vlgmr.msra.gmra.mxu0 %vm88_vm0, %v1032_v8  ;;  %v1299_v16 = vld [vmem:[%s1474_s7] ss:$0 sm:$0xff]  ;;  %s1162_s7 = smov 32  }
   0xa   :  { %519 = vmatpush.bf16.msrb.mxu0 %v1232_v1  ;;  %237 = vmatmul.bf16.vlgmr.msra.gmra.mxu2 %v1161_v9  ;;  %v1310_v33 = vld [vmem:[%s1475_s8] ss:$0 sm:$0xff]  ;;  %s1163_s8 = smov 96  }
   0xb   :  { %315 = vmatpush.bf16.msrb.mxu2 %v1232_v1  ;;  %954 = vmatmul.msk.bf16.vlgmr.msra.gmra.mxu1 %vm88_vm0, %v1032_v8 }
   0xc   :  { %262 = vmatmul.bf16.vlgmr.msra.gmra.mxu3 %v1161_v9  ;;  %532 = vmatpush.bf16.msrb.mxu1 %v1249_v5 }
   0xd   :  { %328 = vmatpush.bf16.msrb.mxu3 %v1249_v5 }
   0xe   :  { %520 = vmatpush.bf16.msrb.mxu0 %v1244_v4 }
   0xf   :  { %316 = vmatpush.bf16.msrb.mxu2 %v1244_v4 }
  0x10   :  { %533 = vmatpush.bf16.msrb.mxu1 %v1257_v7 }
  0x11   :  { %329 = vmatpush.bf16.msrb.mxu3 %v1257_v7 }
  0x12   :  { %655 = vmatpush.bf16.msra.mxu0 %v1232_v1 }
  0x13   :  { %383 = vmatpush.bf16.msra.mxu2 %v1232_v1 }
  0x14   :  { %668 = vmatpush.bf16.msra.mxu1 %v1249_v5 }
  0x15   :  { %396 = vmatpush.bf16.msra.mxu3 %v1249_v5 }
  0x16   :  { %656 = vmatpush.bf16.msra.mxu0 %v1244_v4 }
  0x17   :  { %384 = vmatpush.bf16.msra.mxu2 %v1244_v4 }
  0x18   :  { %669 = vmatpush.bf16.msra.mxu1 %v1257_v7 }
  0x19   :  { %397 = vmatpush.bf16.msra.mxu3 %v1257_v7 }
  0x86   :  { %v110_v12 = vpop.f32.mrf.mxu0 }
  0x87   :  { %v111_v13 = vadd.f32 %v1286_v10, %v110_v12 }
  0x88   :  { %v168_v14 = vpop.f32.mrf.mxu1 }
  0x89   :  { %v169_v15 = vadd.f32 %v1291_v11, %v168_v14  ;;  %131 = vst.msk [vmem:[#allocation2] sm:$0xff] %vm130_vm1, %v111_v13 }
  0x8b   :  { %188 = vst.msk [vmem:[#allocation3] sm:$0xff] %vm88_vm0, %v169_v15 }
  0x8d   :  { %v238_v17 = vpop.f32.mrf.mxu2 }
  0x8e   :  { %v239_v18 = vadd.f32 %v1299_v16, %v238_v17  ;;  %v112_v19 = vpop.f32.mrf.mxu0 }
  0x8f   :  { %v263_v20 = vpop.f32.mrf.mxu3  ;;  %v113_v21 = vadd.f32 %v1286_v10, %v112_v19 }
  0x90   :  { %v170_v22 = vpop.f32.mrf.mxu1  ;;  %v212_v23 = vld [vmem:[#allocation2] sm:$0xff]  ;;  %v264_v38 = vadd.f32 %v1310_v33, %v263_v20 }
  0x91   :  { %v171_v24 = vadd.f32 %v1291_v11, %v170_v22  ;;  %v267_v25 = vadd.f32 %v239_v18, %v212_v23  ;;  %132 = vst.msk [vmem:[#allocation2 + $0x8] sm:$0xff] %vm130_vm1, %v113_v21  ;;  %v1033_v22 = vld [vmem:[%s1467_s0 + $0x8] sm:$0xff] }
  0x92   :  { %v213_v42 = vld [vmem:[#allocation3] sm:$0xff]  ;;  %943 = vmatmul.msk.bf16.gmra.mxu0 %vm88_vm0, %v1033_v22  ;;  %955 = vmatmul.msk.bf16.gmra.mxu1 %vm88_vm0, %v1033_v22 }
  0x93   :  { %189 = vst.msk [vmem:[#allocation3 + $0x8] sm:$0xff] %vm88_vm0, %v171_v24  ;;  %v974_v26 = vmul.f32 -1.442695, %v267_v25 }
  0x95   :  { %v240_v27 = vpop.f32.mrf.mxu2  ;;  %1061 = vpow2.f32 %v974_v26 }
  0x97   :  { %v265_v28 = vpop.f32.mrf.mxu3 }
  0x98   :  { %v302_v56 = vld [vmem:[#allocation2 + $0x8] sm:$0xff] }
  0x9a   :  { %v304_v18 = vld [vmem:[#allocation3 + $0x8] sm:$0xff] }
  0x9b   :  { %v1062_v29 = vpop.eup %1061 }
  0x9c   :  { %v271_v30 = vadd.f32 1.0, %v1062_v29 }
  0x9e   :  { %1063 = vrcp.f32 %v271_v30  ;;  %v283_v35 = vand.u32 2147483648, %v271_v30  ;;  %v281_v37 = vand.u32 2147483647, %v271_v30  ;;  %vm277_vm3 = vweird.f32 %v271_v30 }
  0xa0   :  { %v284_v40 = vor.u32 1.1754944e-38, %v283_v35  ;;  %vm282_vm5 = vcmp.eq.f32.partialorder %v281_v37, 8.507059e+37 }
  0xa4   :  { %v1064_v31 = vpop.eup %1063 }
  0xa5   :  { %v273_v32 = vmul.f32 %v1064_v31, %v271_v30  ;;  %vm278_vm2 = vweird.f32 %v1064_v31 }
  0xa6   :  { %vm279_vm4 = vmor %vm277_vm3, %vm278_vm2 }
  0xa7   :  { %v274_v34 = vsub.f32 1.0, %v273_v32 }
  0xa9   :  { %v275_v36 = vmul.f32 %v1064_v31, %v274_v34 }
  0xab   :  { %v276_v39 = vadd.f32 %v1064_v31, %v275_v36 }
  0xad   :  { %v280_v41 = vsel %vm279_vm4, %v1064_v31, %v276_v39 }
  0xae   :  { %v285_v43 = vsel %vm282_vm5, %v284_v40, %v280_v41 }
  0xaf   :  { %v287_v44 = vmul.f32 %v285_v43, %v264_v38 }
  0xb1   :  { %v288_v45 = vadd.f32 %v287_v44, %v213_v42 }
  0xb3   :  { %1065 = vtanh.f32 %v288_v45 }
  0xb9   :  { %v1066_v46 = vpop.eup %1065 }
  0xba   :  { %v290_v47 = vsub.f32 0.0, %v1066_v46 }
  0xbc   :  { %292 = vrot.lane.b32.xlu0 %v290_v47, %s1162_s7 }
 0x10f   :  { %v115_v25 = vpop.f32.mrf.mxu0  ;;  %v173_v32 = vpop.f32.mrf.mxu1 }
 0x110   :  { %v116_v26 = vadd.f32 %v1286_v10, %v115_v25  ;;  %v174_v35 = vadd.f32 %v1291_v11, %v173_v32 }
 0x112   :  { %133 = vst.msk [vmem:[#allocation2 + $0x10] sm:$0xff] %vm130_vm1, %v116_v26 }
 0x113   :  { %190 = vst.msk [vmem:[#allocation3 + $0x10] sm:$0xff] %vm88_vm0, %v174_v35  ;;  %v1035_v35 = vld [vmem:[%s1467_s0 + $0x18] sm:$0xff] }
 0x117   :  { %v117_v27 = vpop.f32.mrf.mxu0  ;;  %v175_v34 = vpop.f32.mrf.mxu1 }
 0x118   :  { %v118_v28 = vadd.f32 %v1286_v10, %v117_v27  ;;  %v176_v36 = vadd.f32 %v1291_v11, %v175_v34  ;;  %v1034_v34 = vld [vmem:[%s1467_s0 + $0x10] sm:$0xff] }
 0x119   :  { %v370_v37 = vld [vmem:[#allocation2 + $0x10] sm:$0xff]  ;;  %944 = vmatmul.msk.bf16.gmra.mxu0 %vm88_vm0, %v1034_v34  ;;  %956 = vmatmul.msk.bf16.gmra.mxu1 %vm88_vm0, %v1034_v34 }
 0x11a   :  { %134 = vst.msk [vmem:[#allocation2 + $0x18] sm:$0xff] %vm130_vm1, %v118_v28 }
 0x11b   :  { %191 = vst.msk [vmem:[#allocation3 + $0x18] sm:$0xff] %vm88_vm0, %v176_v36 }
 0x129   :  { %945 = vmatmul.msk.bf16.gmra.mxu0 %vm88_vm0, %v1035_v35  ;;  %957 = vmatmul.msk.bf16.gmra.mxu1 %vm88_vm0, %v1035_v35 }
 0x12e   :  { %v293_v48 = vpop.permute.xlu0 %292 }
 0x12f   :  { %v295_v49 = vmul.f32 %v293_v48, %v285_v43 }
 0x131   :  { %297 = vrot.lane.b32.xlu0 %v295_v49, %s1163_s8 }
 0x1a3   :  { %v298_v50 = vpop.permute.xlu0 %297 }
 0x1a4   :  { %v300_v51 = vadd.f32 %v1066_v46, %v298_v50 }
 0x1a6   :  { %v305_v52 = vpack.c.bf16 %v300_v51, %v300_v51 }
 0x1a8   :  { %975 = vmatmul.msk.bf16.vlgmr.msrb.gmra.mxu2 %vm88_vm0, %v305_v52  ;;  %976 = vmatmul.msk.bf16.vlgmr.msrb.gmra.mxu3 %vm88_vm0, %v305_v52 }
 0x1a9   :  { %451 = vmatpush.bf16.msrb.mxu2 %v1232_v1  ;;  %464 = vmatpush.bf16.msrb.mxu3 %v1249_v5 }
 0x1ad   :  { %452 = vmatpush.bf16.msrb.mxu2 %v1244_v4  ;;  %465 = vmatpush.bf16.msrb.mxu3 %v1257_v7 }
 0x22b   :  { %v318_v53 = vpop.f32.mrf.mxu2  ;;  %v331_v54 = vpop.f32.mrf.mxu3 }
 0x22c   :  { %v319_v55 = vadd.f32 %v1299_v16, %v318_v53  ;;  %v332_v13 = vadd.f32 %v1310_v33, %v331_v54 }
 0x22e   :  { %v335_v57 = vadd.f32 %v319_v55, %v302_v56 }
 0x230   :  { %v977_v58 = vmul.f32 -1.442695, %v335_v57 }
 0x232   :  { %1067 = vpow2.f32 %v977_v58  ;;  %v372_v58 = vld [vmem:[#allocation3 + $0x10] sm:$0xff] }
 0x233   :  { %v320_v59 = vpop.f32.mrf.mxu2  ;;  %v333_v60 = vpop.f32.mrf.mxu3 }
 0x238   :  { %v1068_v61 = vpop.eup %1067 }
 0x239   :  { %v339_v62 = vadd.f32 1.0, %v1068_v61 }
 0x23b   :  { %1069 = vrcp.f32 %v339_v62  ;;  %v351_v3 = vand.u32 2147483648, %v339_v62  ;;  %v349_v8 = vand.u32 2147483647, %v339_v62  ;;  %vm345_vm7 = vweird.f32 %v339_v62 }
 0x23d   :  { %v352_v12 = vor.u32 1.1754944e-38, %v351_v3  ;;  %vm350_vm9 = vcmp.eq.f32.partialorder %v349_v8, 8.507059e+37 }
 0x241   :  { %v1070_v63 = vpop.eup %1069 }
 0x242   :  { %v341_v0 = vmul.f32 %v1070_v63, %v339_v62  ;;  %vm346_vm6 = vweird.f32 %v1070_v63 }
 0x243   :  { %vm347_vm8 = vmor %vm345_vm7, %vm346_vm6 }
 0x244   :  { %v342_v2 = vsub.f32 1.0, %v341_v0 }
 0x246   :  { %v343_v6 = vmul.f32 %v1070_v63, %v342_v2 }
 0x248   :  { %v344_v9 = vadd.f32 %v1070_v63, %v343_v6 }
 0x24a   :  { %v348_v14 = vsel %vm347_vm8, %v1070_v63, %v344_v9 }
 0x24b   :  { %v353_v15 = vsel %vm350_vm9, %v352_v12, %v348_v14 }
 0x24c   :  { %v355_v17 = vmul.f32 %v353_v15, %v332_v13  ;;  %v438_v13 = vld [vmem:[#allocation2 + $0x18] sm:$0xff] }
 0x24e   :  { %v356_v19 = vadd.f32 %v355_v17, %v304_v18 }
 0x250   :  { %1071 = vtanh.f32 %v356_v19 }
 0x256   :  { %v1072_v20 = vpop.eup %1071 }
 0x257   :  { %v358_v21 = vsub.f32 %v300_v51, %v1072_v20 }
 0x259   :  { %360 = vrot.lane.b32.xlu1 %v358_v21, %s1162_s7 }
 0x2cb   :  { %v361_v23 = vpop.permute.xlu1 %360 }
 0x2cc   :  { %v363_v24 = vmul.f32 %v361_v23, %v353_v15 }
 0x2ce   :  { %365 = vrot.lane.b32.xlu1 %v363_v24, %s1163_s8 }
 0x340   :  { %v366_v29 = vpop.permute.xlu1 %365 }
 0x341   :  { %v368_v30 = vadd.f32 %v1072_v20, %v366_v29  ;;  %v440_v29 = vld [vmem:[#allocation3 + $0x18] sm:$0xff] }
 0x343   :  { %v373_v31 = vpack.c.bf16 %v368_v30, %v368_v30 }
 0x345   :  { %978 = vmatmul.msk.bf16.vlgmr.msra.gmra.mxu2 %vm88_vm0, %v373_v31  ;;  %979 = vmatmul.msk.bf16.vlgmr.msra.gmra.mxu3 %vm88_vm0, %v373_v31 }
 0x346   :  { %587 = vmatpush.bf16.msra.mxu2 %v1232_v1  ;;  %600 = vmatpush.bf16.msra.mxu3 %v1249_v5 }
 0x34a   :  { %588 = vmatpush.bf16.msra.mxu2 %v1244_v4  ;;  %601 = vmatpush.bf16.msra.mxu3 %v1257_v7 }
 0x3c8   :  { %v386_v38 = vpop.f32.mrf.mxu2  ;;  %v399_v39 = vpop.f32.mrf.mxu3 }
 0x3c9   :  { %v387_v40 = vadd.f32 %v1299_v16, %v386_v38  ;;  %v400_v55 = vadd.f32 %v1310_v33, %v399_v39  ;;  %v120_v38 = vpop.f32.mrf.mxu0  ;;  %v178_v39 = vpop.f32.mrf.mxu1 }
 0x3cb   :  { %v403_v41 = vadd.f32 %v387_v40, %v370_v37  ;;  %v121_v40 = vadd.f32 %v1286_v10, %v120_v38 }
 0x3cd   :  { %v980_v42 = vmul.f32 -1.442695, %v403_v41  ;;  %v179_v41 = vadd.f32 %v1291_v11, %v178_v39  ;;  %135 = vst.msk [vmem:[#allocation2 + $0x20] sm:$0xff] %vm130_vm1, %v121_v40 }
 0x3cf   :  { %1073 = vpow2.f32 %v980_v42  ;;  %192 = vst.msk [vmem:[#allocation3 + $0x20] sm:$0xff] %vm88_vm0, %v179_v41 }
 0x3d0   :  { %v388_v43 = vpop.f32.mrf.mxu2  ;;  %v401_v44 = vpop.f32.mrf.mxu3 }
 0x3d1   :  { %v122_v42 = vpop.f32.mrf.mxu0  ;;  %v180_v43 = vpop.f32.mrf.mxu1 }
 0x3d2   :  { %v123_v44 = vadd.f32 %v1286_v10, %v122_v42 }
 0x3d4   :  { %136 = vst.msk [vmem:[#allocation2 + $0x28] sm:$0xff] %vm130_vm1, %v123_v44 }
 0x3d5   :  { %v1074_v45 = vpop.eup %1073 }
 0x3d6   :  { %v407_v46 = vadd.f32 1.0, %v1074_v45  ;;  %v181_v45 = vadd.f32 %v1291_v11, %v180_v43 }
 0x3d8   :  { %1075 = vrcp.f32 %v407_v46  ;;  %v419_v50 = vand.u32 2147483648, %v407_v46  ;;  %v417_v52 = vand.u32 2147483647, %v407_v46  ;;  %vm413_vm11 = vweird.f32 %v407_v46  ;;  %193 = vst.msk [vmem:[#allocation3 + $0x28] sm:$0xff] %vm88_vm0, %v181_v45 }
 0x3da   :  { %v420_v54 = vor.u32 1.1754944e-38, %v419_v50  ;;  %vm418_vm13 = vcmp.eq.f32.partialorder %v417_v52, 8.507059e+37 }
 0x3de   :  { %v1076_v47 = vpop.eup %1075 }
 0x3df   :  { %v409_v48 = vmul.f32 %v1076_v47, %v407_v46  ;;  %vm414_vm10 = vweird.f32 %v1076_v47  ;;  %v125_v46 = vpop.f32.mrf.mxu0 }
 0x3e0   :  { %vm415_vm12 = vmor %vm413_vm11, %vm414_vm10 }
 0x3e1   :  { %v410_v49 = vsub.f32 1.0, %v409_v48  ;;  %v126_v48 = vadd.f32 %v1286_v10, %v125_v46 }
 0x3e3   :  { %v411_v51 = vmul.f32 %v1076_v47, %v410_v49  ;;  %137 = vst.msk [vmem:[#allocation2 + $0x30] sm:$0xff] %vm130_vm1, %v126_v48  ;;  %v576_v48 = vld [vmem:[#allocation3 + $0x28] sm:$0xff] }
 0x3e5   :  { %v412_v53 = vadd.f32 %v1076_v47, %v411_v51 }
 0x3e7   :  { %v416_v56 = vsel %vm415_vm12, %v1076_v47, %v412_v53  ;;  %v183_v47 = vpop.f32.mrf.mxu1  ;;  %v127_v53 = vpop.f32.mrf.mxu0 }
 0x3e8   :  { %v421_v57 = vsel %vm418_vm13, %v420_v54, %v416_v56  ;;  %v184_v49 = vadd.f32 %v1291_v11, %v183_v47 }
 0x3e9   :  { %v423_v59 = vmul.f32 %v421_v57, %v400_v55  ;;  %v128_v55 = vadd.f32 %v1286_v10, %v127_v53 }
 0x3ea   :  { %194 = vst.msk [vmem:[#allocation3 + $0x30] sm:$0xff] %vm88_vm0, %v184_v49 }
 0x3eb   :  { %v424_v60 = vadd.f32 %v423_v59, %v372_v58  ;;  %138 = vst.msk [vmem:[#allocation2 + $0x38] sm:$0xff] %vm130_vm1, %v128_v55 }
 0x3ed   :  { %1077 = vtanh.f32 %v424_v60  ;;  %v506_v60 = vld [vmem:[#allocation2 + $0x20] sm:$0xff] }
 0x3ef   :  { %v185_v54 = vpop.f32.mrf.mxu1 }
 0x3f0   :  { %v186_v56 = vadd.f32 %v1291_v11, %v185_v54 }
 0x3f2   :  { %195 = vst.msk [vmem:[#allocation3 + $0x38] sm:$0xff] %vm88_vm0, %v186_v56 }
 0x3f3   :  { %v1078_v61 = vpop.eup %1077 }
 0x3f4   :  { %v426_v62 = vsub.f32 %v368_v30, %v1078_v61 }
 0x3f6   :  { %428 = vrot.lane.b32.xlu2 %v426_v62, %s1162_s7 }
 0x450   :  { %v429_v63 = vpop.permute.xlu2 %428 }
 0x451   :  { %v431_v0 = vmul.f32 %v429_v63, %v421_v57 }
 0x453   :  { %433 = vrot.lane.b32.xlu2 %v431_v0, %s1163_s8 }
 0x4ad   :  { %v434_v2 = vpop.permute.xlu2 %433 }
 0x4ae   :  { %v436_v3 = vadd.f32 %v1078_v61, %v434_v2 }
 0x4b0   :  { %v441_v6 = vpack.c.bf16 %v436_v3, %v436_v3 }
 0x4b2   :  { %981 = vmatmul.msk.bf16.vlgmr.msrb.gmra.mxu2 %vm88_vm0, %v441_v6  ;;  %982 = vmatmul.msk.bf16.vlgmr.msrb.gmra.mxu3 %vm88_vm0, %v441_v6 }
 0x4b3   :  { %723 = vmatpush.bf16.msrb.mxu2 %v1232_v1  ;;  %736 = vmatpush.bf16.msrb.mxu3 %v1249_v5 }
 0x4b7   :  { %724 = vmatpush.bf16.msrb.mxu2 %v1244_v4  ;;  %737 = vmatpush.bf16.msrb.mxu3 %v1257_v7 }
 0x535   :  { %v454_v8 = vpop.f32.mrf.mxu2  ;;  %v467_v9 = vpop.f32.mrf.mxu3 }
 0x536   :  { %v455_v12 = vadd.f32 %v1299_v16, %v454_v8  ;;  %v468_v25 = vadd.f32 %v1310_v33, %v467_v9 }
 0x538   :  { %v471_v14 = vadd.f32 %v455_v12, %v438_v13 }
 0x53a   :  { %v983_v15 = vmul.f32 -1.442695, %v471_v14 }
 0x53c   :  { %1079 = vpow2.f32 %v983_v15 }
 0x53d   :  { %v456_v17 = vpop.f32.mrf.mxu2  ;;  %v469_v18 = vpop.f32.mrf.mxu3 }
 0x542   :  { %v1080_v19 = vpop.eup %1079 }
 0x543   :  { %v475_v20 = vadd.f32 1.0, %v1080_v19 }
 0x545   :  { %1081 = vrcp.f32 %v475_v20  ;;  %v487_v22 = vand.u32 2147483648, %v475_v20  ;;  %v485_v7 = vand.u32 2147483647, %v475_v20  ;;  %vm481_vm15 = vweird.f32 %v475_v20 }
 0x547   :  { %v488_v24 = vor.u32 1.1754944e-38, %v487_v22  ;;  %vm486_vm3 = vcmp.eq.f32.partialorder %v485_v7, 8.507059e+37 }
 0x54b   :  { %v1082_v1 = vpop.eup %1081 }
 0x54c   :  { %v477_v21 = vmul.f32 %v1082_v1, %v475_v20  ;;  %vm482_vm14 = vweird.f32 %v1082_v1  ;;  %v508_v20 = vld [vmem:[#allocation3 + $0x20] sm:$0xff] }
 0x54d   :  { %vm483_vm2 = vmor %vm481_vm15, %vm482_vm14 }
 0x54e   :  { %v478_v5 = vsub.f32 1.0, %v477_v21 }
 0x550   :  { %v479_v4 = vmul.f32 %v1082_v1, %v478_v5 }
 0x552   :  { %v480_v23 = vadd.f32 %v1082_v1, %v479_v4 }
 0x554   :  { %v484_v26 = vsel %vm483_vm2, %v1082_v1, %v480_v23 }
 0x555   :  { %v489_v27 = vsel %vm486_vm3, %v488_v24, %v484_v26 }
 0x556   :  { %v491_v28 = vmul.f32 %v489_v27, %v468_v25 }
 0x558   :  { %v492_v30 = vadd.f32 %v491_v28, %v440_v29  ;;  %v574_v28 = vld [vmem:[#allocation2 + $0x28] sm:$0xff] }
 0x55a   :  { %1083 = vtanh.f32 %v492_v30 }
 0x560   :  { %v1084_v31 = vpop.eup %1083 }
 0x561   :  { %v494_v32 = vsub.f32 %v436_v3, %v1084_v31 }
 0x563   :  { %496 = vrot.lane.b32.xlu0 %v494_v32, %s1162_s7 }
 0x5d5   :  { %v497_v36 = vpop.permute.xlu0 %496 }
 0x5d6   :  { %v499_v37 = vmul.f32 %v497_v36, %v489_v27 }
 0x5d8   :  { %501 = vrot.lane.b32.xlu1 %v499_v37, %s1163_s8 }
 0x64a   :  { %v502_v50 = vpop.permute.xlu1 %501 }
 0x64b   :  { %v504_v51 = vadd.f32 %v1084_v31, %v502_v50 }
 0x64d   :  { %v509_v52 = vpack.c.bf16 %v504_v51, %v504_v51 }
 0x64f   :  { %984 = vmatmul.msk.bf16.vlgmr.msrb.gmra.mxu0 %vm88_vm0, %v509_v52  ;;  %985 = vmatmul.msk.bf16.vlgmr.msrb.gmra.mxu1 %vm88_vm0, %v509_v52 }
 0x6cc   :  { %v522_v57 = vpop.f32.mrf.mxu0  ;;  %v535_v58 = vpop.f32.mrf.mxu1 }
 0x6cd   :  { %v523_v59 = vadd.f32 %v1299_v16, %v522_v57  ;;  %v536_v15 = vadd.f32 %v1310_v33, %v535_v58 }
 0x6cf   :  { %v539_v61 = vadd.f32 %v523_v59, %v506_v60  ;;  %v642_v60 = vld [vmem:[#allocation2 + $0x30] sm:$0xff] }
 0x6d1   :  { %v986_v62 = vmul.f32 -1.442695, %v539_v61 }
 0x6d3   :  { %1085 = vpow2.f32 %v986_v62 }
 0x6d4   :  { %v524_v63 = vpop.f32.mrf.mxu0  ;;  %v537_v0 = vpop.f32.mrf.mxu1 }
 0x6d9   :  { %v1086_v2 = vpop.eup %1085 }
 0x6da   :  { %v543_v3 = vadd.f32 1.0, %v1086_v2 }
 0x6dc   :  { %1087 = vrcp.f32 %v543_v3  ;;  %v555_v8 = vand.u32 2147483648, %v543_v3  ;;  %v553_v12 = vand.u32 2147483647, %v543_v3  ;;  %vm549_vm4 = vweird.f32 %v543_v3 }
 0x6de   :  { %v556_v14 = vor.u32 1.1754944e-38, %v555_v8  ;;  %vm554_vm6 = vcmp.eq.f32.partialorder %v553_v12, 8.507059e+37 }
 0x6e2   :  { %v1088_v10 = vpop.eup %1087 }
 0x6e3   :  { %v545_v6 = vmul.f32 %v1088_v10, %v543_v3  ;;  %vm550_vm1 = vweird.f32 %v1088_v10 }
 0x6e4   :  { %vm551_vm5 = vmor %vm549_vm4, %vm550_vm1 }
 0x6e5   :  { %v546_v11 = vsub.f32 1.0, %v545_v6 }
 0x6e7   :  { %v547_v9 = vmul.f32 %v1088_v10, %v546_v11 }
 0x6e9   :  { %v548_v13 = vadd.f32 %v1088_v10, %v547_v9 }
 0x6eb   :  { %v552_v17 = vsel %vm551_vm5, %v1088_v10, %v548_v13 }
 0x6ec   :  { %v557_v18 = vsel %vm554_vm6, %v556_v14, %v552_v17 }
 0x6ed   :  { %v559_v19 = vmul.f32 %v557_v18, %v536_v15 }
 0x6ef   :  { %v560_v1 = vadd.f32 %v559_v19, %v508_v20  ;;  %v644_v20 = vld [vmem:[#allocation3 + $0x30] sm:$0xff] }
 0x6f1   :  { %1089 = vtanh.f32 %v560_v1 }
 0x6f7   :  { %v1090_v21 = vpop.eup %1089 }
 0x6f8   :  { %v562_v5 = vsub.f32 %v504_v51, %v1090_v21 }
 0x6fa   :  { %564 = vrot.lane.b32.xlu2 %v562_v5, %s1162_s7 }
 0x754   :  { %v565_v22 = vpop.permute.xlu2 %564 }
 0x755   :  { %v567_v4 = vmul.f32 %v565_v22, %v557_v18 }
 0x757   :  { %569 = vrot.lane.b32.xlu0 %v567_v4, %s1163_s8 }
 0x7c9   :  { %v570_v7 = vpop.permute.xlu0 %569 }
 0x7ca   :  { %v572_v23 = vadd.f32 %v1090_v21, %v570_v7 }
 0x7cc   :  { %v577_v24 = vpack.c.bf16 %v572_v23, %v572_v23 }
 0x7ce   :  { %987 = vmatmul.msk.bf16.vlgmr.msra.gmra.mxu2 %vm88_vm0, %v577_v24  ;;  %988 = vmatmul.msk.bf16.vlgmr.msra.gmra.mxu3 %vm88_vm0, %v577_v24 }
 0x851   :  { %v590_v25 = vpop.f32.mrf.mxu2  ;;  %v603_v26 = vpop.f32.mrf.mxu3 }
 0x852   :  { %v591_v27 = vadd.f32 %v1299_v16, %v590_v25  ;;  %v604_v44 = vadd.f32 %v1310_v33, %v603_v26 }
 0x854   :  { %v607_v29 = vadd.f32 %v591_v27, %v574_v28  ;;  %v710_v28 = vld [vmem:[#allocation2 + $0x38] sm:$0xff] }
 0x856   :  { %v989_v30 = vmul.f32 -1.442695, %v607_v29 }
 0x858   :  { %1091 = vpow2.f32 %v989_v30 }
 0x859   :  { %v592_v31 = vpop.f32.mrf.mxu2  ;;  %v605_v32 = vpop.f32.mrf.mxu3 }
 0x85e   :  { %v1092_v34 = vpop.eup %1091 }
 0x85f   :  { %v611_v35 = vadd.f32 1.0, %v1092_v34 }
 0x861   :  { %1093 = vrcp.f32 %v611_v35  ;;  %v623_v39 = vand.u32 2147483648, %v611_v35  ;;  %v621_v41 = vand.u32 2147483647, %v611_v35  ;;  %vm617_vm8 = vweird.f32 %v611_v35 }
 0x863   :  { %v624_v43 = vor.u32 1.1754944e-38, %v623_v39  ;;  %vm622_vm10 = vcmp.eq.f32.partialorder %v621_v41, 8.507059e+37 }
 0x867   :  { %v1094_v36 = vpop.eup %1093 }
 0x868   :  { %v613_v37 = vmul.f32 %v1094_v36, %v611_v35  ;;  %vm618_vm7 = vweird.f32 %v1094_v36 }
 0x869   :  { %vm619_vm9 = vmor %vm617_vm8, %vm618_vm7 }
 0x86a   :  { %v614_v38 = vsub.f32 1.0, %v613_v37 }
 0x86c   :  { %v615_v40 = vmul.f32 %v1094_v36, %v614_v38 }
 0x86e   :  { %v616_v42 = vadd.f32 %v1094_v36, %v615_v40 }
 0x870   :  { %v620_v45 = vsel %vm619_vm9, %v1094_v36, %v616_v42 }
 0x871   :  { %v625_v46 = vsel %vm622_vm10, %v624_v43, %v620_v45 }
 0x872   :  { %v627_v47 = vmul.f32 %v625_v46, %v604_v44 }
 0x874   :  { %v628_v49 = vadd.f32 %v627_v47, %v576_v48  ;;  %v712_v47 = vld [vmem:[#allocation3 + $0x38] sm:$0xff] }
 0x876   :  { %1095 = vtanh.f32 %v628_v49 }
 0x87c   :  { %v1096_v50 = vpop.eup %1095 }
 0x87d   :  { %v630_v51 = vsub.f32 %v572_v23, %v1096_v50 }
 0x87f   :  { %632 = vrot.lane.b32.xlu1 %v630_v51, %s1162_s7  ;;  %v1022_v51 = vld [vmem:[%s1476_s9 + $0x28] sm:$0xf] }
 0x8f1   :  { %v633_v52 = vpop.permute.xlu1 %632 }
 0x8f2   :  { %v635_v53 = vmul.f32 %v633_v52, %v625_v46  ;;  %v1051_v52 = vld [vmem:[%s1476_s9 + $0x34] sm:$0xf0] }
 0x8f4   :  { %637 = vrot.lane.b32.xlu2 %v635_v53, %s1163_s8  ;;  %v1023_v53 = vor.u32 %v1051_v52, %v1022_v51 }
 0x8f6   :  { %862 = vmatpush.bf16.msra.mxu2 %v1023_v53 }
 0x94e   :  { %v638_v54 = vpop.permute.xlu2 %637 }
 0x94f   :  { %v640_v55 = vadd.f32 %v1096_v50, %v638_v54  ;;  %v1024_v54 = vld [vmem:[%s1476_s9 + $0x38] sm:$0xf0] }
 0x951   :  { %v645_v56 = vpack.c.bf16 %v640_v55, %v640_v55 }
 0x953   :  { %990 = vmatmul.msk.bf16.vlgmr.msra.gmra.mxu0 %vm88_vm0, %v645_v56  ;;  %991 = vmatmul.msk.bf16.vlgmr.msra.gmra.mxu1 %vm88_vm0, %v645_v56  ;;  %v1050_v56 = vld [vmem:[%s1476_s9 + $0x2c] sm:$0xf0] }
 0x9d0   :  { %v658_v57 = vpop.f32.mrf.mxu0  ;;  %v671_v58 = vpop.f32.mrf.mxu1 }
 0x9d1   :  { %v659_v59 = vadd.f32 %v1299_v16, %v658_v57  ;;  %v672_v15 = vadd.f32 %v1310_v33, %v671_v58 }
 0x9d3   :  { %v675_v61 = vadd.f32 %v659_v59, %v642_v60  ;;  %v1048_v59 = vld [vmem:[%s1476_s9 + $0x24] sm:$0xf]  ;;  %v1016_v60 = vld [vmem:[%s1476_s9 + $0x30] sm:$0xf0] }
 0x9d5   :  { %v992_v62 = vmul.f32 -1.442695, %v675_v61  ;;  %v1006_v61 = vld [vmem:[%s1476_s9 + $0x8] sm:$0xf] }
 0x9d7   :  { %1097 = vpow2.f32 %v992_v62  ;;  %v1019_v62 = vor.u32 %v1048_v59, %v1016_v60 }
 0x9d8   :  { %v660_v63 = vpop.f32.mrf.mxu0  ;;  %v673_v0 = vpop.f32.mrf.mxu1 }
 0x9d9   :  { %v1047_v63 = vld [vmem:[%s1476_s9 + $0x14] sm:$0xf0]  ;;  %v1045_v0 = vld [vmem:[%s1476_s9 + $0xc] sm:$0xf]  ;;  %849 = vmatpush.bf16.msrb.mxu1 %v1019_v62 }
 0x9dd   :  { %v1098_v2 = vpop.eup %1097 }
 0x9de   :  { %v679_v3 = vadd.f32 1.0, %v1098_v2  ;;  %v1008_v2 = vld [vmem:[%s1476_s9 + $0x18] sm:$0xf0] }
 0x9e0   :  { %1099 = vrcp.f32 %v679_v3  ;;  %v691_v8 = vand.u32 2147483648, %v679_v3  ;;  %v689_v12 = vand.u32 2147483647, %v679_v3  ;;  %vm685_vm12 = vweird.f32 %v679_v3 }
 0x9e2   :  { %v692_v14 = vor.u32 1.1754944e-38, %v691_v8  ;;  %vm690_vm14 = vcmp.eq.f32.partialorder %v689_v12, 8.507059e+37  ;;  %v998_v8 = vld [vmem:[%s1476_s9] sm:$0xf]  ;;  %v1044_v12 = vld [vmem:[%s1476_s9 + $0x4] sm:$0xf] }
 0x9e6   :  { %v1100_v10 = vpop.eup %1099 }
 0x9e7   :  { %v681_v6 = vmul.f32 %v1100_v10, %v679_v3  ;;  %vm686_vm11 = vweird.f32 %v1100_v10  ;;  %v1007_v3 = vor.u32 %v1047_v63, %v1006_v61 }
 0x9e8   :  { %vm687_vm13 = vmor %vm685_vm12, %vm686_vm11 }
 0x9e9   :  { %v682_v11 = vsub.f32 1.0, %v681_v6  ;;  %863 = vmatpush.bf16.msra.mxu2 %v1007_v3 }
 0x9eb   :  { %v683_v9 = vmul.f32 %v1100_v10, %v682_v11 }
 0x9ed   :  { %v684_v13 = vadd.f32 %v1100_v10, %v683_v9  ;;  %v1046_v9 = vld [vmem:[%s1476_s9 + $0xc] sm:$0xf0] }
 0x9ef   :  { %v688_v17 = vsel %vm687_vm13, %v1100_v10, %v684_v13  ;;  %v1011_v10 = vor.u32 %v1045_v0, %v1008_v2  ;;  %v999_v13 = vor.u32 %v1046_v9, %v998_v8 }
 0x9f0   :  { %v693_v18 = vsel %vm690_vm14, %v692_v14, %v688_v17  ;;  %v1000_v14 = vld [vmem:[%s1476_s9 + $0x10] sm:$0xf0] }
 0x9f1   :  { %v695_v19 = vmul.f32 %v693_v18, %v672_v15  ;;  %v1003_v15 = vor.u32 %v1044_v12, %v1000_v14 }
 0x9f3   :  { %v696_v1 = vadd.f32 %v695_v19, %v644_v20  ;;  %850 = vmatpush.bf16.msrb.mxu1 %v1003_v15 }
 0x9f5   :  { %1101 = vtanh.f32 %v696_v1 }
 0x9fb   :  { %v1102_v21 = vpop.eup %1101 }
 0x9fc   :  { %v698_v5 = vsub.f32 %v640_v55, %v1102_v21  ;;  %v1014_v55 = vld [vmem:[%s1476_s9 + $0x20] sm:$0xf] }
 0x9fd   :  { %v1015_v58 = vor.u32 %v1050_v56, %v1014_v55 }
 0x9fe   :  { %700 = vrot.lane.b32.xlu0 %v698_v5, %s1162_s7 }
 0x9ff   :  { %836 = vmatpush.bf16.msrb.mxu0 %v1015_v58 }
 0xa03   :  { %837 = vmatpush.bf16.msrb.mxu0 %v999_v13 }
 0xa70   :  { %v701_v22 = vpop.permute.xlu0 %700 }
 0xa71   :  { %v703_v4 = vmul.f32 %v701_v22, %v693_v18 }
 0xa73   :  { %705 = vrot.lane.b32.xlu1 %v703_v4, %s1163_s8 }
 0xae5   :  { %v706_v7 = vpop.permute.xlu1 %705 }
 0xae6   :  { %v708_v23 = vadd.f32 %v1102_v21, %v706_v7 }
 0xae8   :  { %v713_v24 = vpack.c.bf16 %v708_v23, %v708_v23 }
 0xaea   :  { %993 = vmatmul.msk.bf16.vlgmr.msrb.gmra.mxu2 %vm88_vm0, %v713_v24  ;;  %994 = vmatmul.msk.bf16.vlgmr.msrb.gmra.mxu3 %vm88_vm0, %v713_v24 }
 0xb6d   :  { %v726_v25 = vpop.f32.mrf.mxu2  ;;  %v739_v26 = vpop.f32.mrf.mxu3 }
 0xb6e   :  { %v727_v27 = vadd.f32 %v1299_v16, %v726_v25  ;;  %v740_v43 = vadd.f32 %v1310_v33, %v739_v26  ;;  %v1049_v33 = vld [vmem:[%s1476_s9 + $0x2c] sm:$0xf] }
 0xb6f   :  { %v1027_v57 = vor.u32 %v1049_v33, %v1024_v54 }
 0xb70   :  { %v743_v29 = vadd.f32 %v727_v27, %v710_v28 }
 0xb71   :  { %875 = vmatpush.bf16.msra.mxu3 %v1027_v57 }
 0xb72   :  { %v995_v30 = vmul.f32 -1.442695, %v743_v29 }
 0xb74   :  { %1103 = vpow2.f32 %v995_v30 }
 0xb75   :  { %v728_v31 = vpop.f32.mrf.mxu2  ;;  %v741_v32 = vpop.f32.mrf.mxu3  ;;  %876 = vmatpush.bf16.msra.mxu3 %v1011_v10 }
 0xb7a   :  { %v1104_v34 = vpop.eup %1103 }
 0xb7b   :  { %v747_v35 = vadd.f32 1.0, %v1104_v34 }
 0xb7d   :  { %1105 = vrcp.f32 %v747_v35  ;;  %v759_v39 = vand.u32 2147483648, %v747_v35  ;;  %v757_v41 = vand.u32 2147483647, %v747_v35  ;;  %vm753_vm2 = vweird.f32 %v747_v35 }
 0xb7f   :  { %v760_v16 = vor.u32 1.1754944e-38, %v759_v39  ;;  %vm758_vm1 = vcmp.eq.f32.partialorder %v757_v41, 8.507059e+37 }
 0xb83   :  { %v1106_v36 = vpop.eup %1105 }
 0xb84   :  { %v749_v37 = vmul.f32 %v1106_v36, %v747_v35  ;;  %vm754_vm15 = vweird.f32 %v1106_v36 }
 0xb85   :  { %vm755_vm3 = vmor %vm753_vm2, %vm754_vm15 }
 0xb86   :  { %v750_v38 = vsub.f32 1.0, %v749_v37 }
 0xb88   :  { %v751_v40 = vmul.f32 %v1106_v36, %v750_v38 }
 0xb8a   :  { %v752_v42 = vadd.f32 %v1106_v36, %v751_v40 }
 0xb8c   :  { %v756_v44 = vsel %vm755_vm3, %v1106_v36, %v752_v42 }
 0xb8d   :  { %v761_v45 = vsel %vm758_vm1, %v760_v16, %v756_v44 }
 0xb8e   :  { %v763_v46 = vmul.f32 %v761_v45, %v740_v43 }
 0xb90   :  { %v764_v48 = vadd.f32 %v763_v46, %v712_v47 }
 0xb92   :  { %1107 = vtanh.f32 %v764_v48 }
 0xb98   :  { %v1108_v49 = vpop.eup %1107 }
 0xb99   :  { %v766_v50 = vsub.f32 %v708_v23, %v1108_v49 }
 0xb9b   :  { %768 = vrot.lane.b32.xlu2 %v766_v50, %s1162_s7 }
 0xbf5   :  { %v769_v6 = vpop.permute.xlu2 %768 }
 0xbf6   :  { %v771_v11 = vmul.f32 %v769_v6, %v761_v45 }
 0xbf8   :  { %773 = vrot.lane.b32.xlu0 %v771_v11, %s1163_s8  ;;  %s1164_s8 = smov [#allocation4]  }
 0xbf9   :  { %s891_s28 = sshll.u32 %s1164_s8, 4  ;;  %s892_s28 = int_to_ptr.vmem [resolvable:$true] %s891_s28 }
 0xc6a   :  { %v774_v17 = vpop.permute.xlu0 %773 }
 0xc6b   :  { %v776_v18 = vadd.f32 %v1108_v49, %v774_v17 }
 0xc6d   :  { %v778_v19 = vpack.c.bf16 %v776_v18, %v776_v18  ;;  %777 = vst.msk [vmem:[#allocation4] sm:$0xff] %vm88_vm0, %v776_v18 }
 0xc6e   :  { %896 = dma.vmem_to_hbm [thread:$0]  %s892_s28, 128, %s894_s30, [#allocation5]  }
 0xc6f   :  { %1028 = vmatmul.msk.bf16.vlgmr.msrb.gmra.mxu0 %vm88_vm0, %v778_v19  ;;  %1029 = vmatmul.msk.bf16.vlgmr.msrb.gmra.mxu1 %vm88_vm0, %v778_v19 }
 0xc70   :  { %1030 = vmatmul.msk.bf16.vlgmr.msra.gmra.mxu2 %vm88_vm0, %v778_v19  ;;  %1031 = vmatmul.msk.bf16.vlgmr.msra.gmra.mxu3 %vm88_vm0, %v778_v19 }
 0xcec   :  { %v839_v20 = vpop.f32.mrf.mxu0  ;;  %v852_v1 = vpop.f32.mrf.mxu1 }
 0xced   :  { %882 = vst [vmem:[#allocation6] sm:$0xff] %v839_v20 }
 0xcee   :  { %883 = vst [vmem:[#allocation6 + $0x8] sm:$0xff] %v852_v1 }
 0xcf3   :  { %v865_v21 = vpop.f32.mrf.mxu2  ;;  %v878_v5 = vpop.f32.mrf.mxu3 }
 0xcf4   :  { %884 = vst [vmem:[#allocation6 + $0x10] sm:$0xff] %v865_v21  ;;  %v841_v22 = vpop.f32.mrf.mxu0  ;;  %v854_v4 = vpop.f32.mrf.mxu1 }
 0xcf5   :  { %885 = vst [vmem:[#allocation6 + $0x18] sm:$0xff] %v878_v5 }
 0xcf6   :  { %907 = dma.vmem_to_hbm [thread:$0]  %s903_s12, 512, %s905_s2, [#allocation7]  }
 0xcfb   :  { %v867_v7 = vpop.f32.mrf.mxu2  ;;  %v880_v23 = vpop.f32.mrf.mxu3 }
 0xcfc   :  { %1157 = dma.done.wait [#allocation5], 128  }
 0xcfd   :  { %1158 = vsyncadd [#allocation5], 4294967168 }
 0xcfe   :  { %1159 = dma.done.wait [#allocation7], 512  }
 0xcff   :  { %1160 = vsyncadd [#allocation7], 4294966784 }
 0xd00   :  { %916 = vsyncpa [#allocation5], 1 }
 0xd01   :  { %917 = vsyncpa [#allocation7], 1 }

</bundles_post_ra>
